<compile_context>
chip_gen: v7x
topology: tpu7x:2x2x1
jax: 0.10.0
libtpu: 0.0.40
codegen_flags: <defaults>
</compile_context>

<pallas_src>
import functools

import jax
import jax.numpy as jnp
from jax.experimental import pallas as pl
from jax.experimental.pallas import tpu as pltpu


def _round_up(x, m):
    return (x + m - 1) // m * m


def zhang_kernel(x_ref, w_ref, b_ref, prob_ref, asp_ref, *, e):
    """x_ref: [TB, 2E] rows packed as (u_v1|u_v2 | i_v1|i_v2).

    prob        = sigmoid(sum(u * i))        (lane rotate + reduce, no slices)
    asp[:, :A]  = u_v1 @ W + b               (one MXU matmul against a
    asp[:, A:]  = i_v1 @ W + b                block-diagonal zero-padded weight)
    """
    x = x_ref[...]                                      # [TB, 2E] f32

    # Rotating the 2E lanes by E pairs every u-lane with its i-lane; each u*i
    # product then appears exactly twice in the full-lane sum, hence the 0.5.
    # pltpu.roll uses the XLU slot, so this is essentially free in a DMA-bound
    # loop and avoids any narrow / offset lane layouts.
    xr = pltpu.roll(x, shift=e, axis=1)
    s = 0.5 * jnp.sum(x * xr, axis=1, keepdims=True)    # [TB, 1]
    prob_ref[...] = jax.nn.sigmoid(s)

    # Both aspect heads in ONE MXU matmul.  w_ref is block-diagonal:
    # rows [0:E1) x cols [0:A) and rows [E:E+E1) x cols [A:2A) hold W, rest 0.
    asp_ref[...] = (
        jnp.dot(x, w_ref[...], preferred_element_type=jnp.float32) + b_ref[...]
    )


def _choose_tile(b_rows, cap=8192):
    """Batch tile: big enough to amortize the ~0.35us grid-step cost, but at
    least 2 tiles for large batches so the parallel grid axis shards across
    both TensorCores on v7x."""
    b8 = _round_up(max(b_rows, 1), 8)
    if b8 <= 512:
        return b8                                   # tiny batch -> single tile
    n_tiles = max(2, pl.cdiv(b8, cap))
    return min(cap, _round_up(pl.cdiv(b8, n_tiles), 8))


def zhang_forward(params, user_id, item_id):
    """Returns (prob [B], pred_asp_u [B,A], pred_asp_i [B,A])."""
    tbl = params["embed_u"]                  # [U, E1+E2] pre-concatenated table
    w = params["lin_w_t"]                    # [E1, A] (pre-transposed vs torch)
    b = params["lin_b"]                      # [A]
    E1, A = w.shape
    E = tbl.shape[1]
    B = user_id.shape[0]

    # One gather per id from the pre-concatenated table, then a single lane
    # concat -> one packed [B, 2E] stream (candidate for input fusion).
    # Faithful to the PyTorch forward: items use the USER tables.
    x = jnp.concatenate([tbl[user_id], tbl[item_id]], axis=1)     # [B, 2E]

    # Block-diagonal zero-padded weight + doubled bias: removes every in-kernel
    # slice/concat.  Exact for finite inputs (0 * x = 0); tiny (2E x 2A).
    w2 = jnp.zeros((2 * E, 2 * A), jnp.float32)
    w2 = w2.at[:E1, :A].set(w)
    w2 = w2.at[E:E + E1, A:].set(w)
    b2 = jnp.concatenate([b, b])[None, :]                         # [1, 2A]

    TB = _choose_tile(B)
    B_pad = _round_up(B, TB)
    if B_pad != B:
        x = jnp.pad(x, ((0, B_pad - B), (0, 0)))    # zero rows, sliced off below
    grid = (B_pad // TB,)

    out_shapes = (
        jax.ShapeDtypeStruct((B_pad, 1), jnp.float32),        # prob
        jax.ShapeDtypeStruct((B_pad, 2 * A), jnp.float32),    # [asp_u | asp_i]
    )

    flops = 2 * B_pad * (2 * E) * (2 * A) + 3 * B_pad * (2 * E)
    bytes_accessed = 4 * (B_pad * 2 * E          # packed input
                          + 2 * E * 2 * A + 2 * A  # weight + bias
                          + B_pad                  # prob
                          + B_pad * 2 * A)         # aspects

    prob, asp = pl.pallas_call(
        functools.partial(zhang_kernel, e=E),
        out_shape=out_shapes,
        grid=grid,
        in_specs=[
            pl.BlockSpec((TB, 2 * E), lambda i: (i, 0)),      # packed uv|iv
            pl.BlockSpec((2 * E, 2 * A), lambda i: (0, 0)),   # weight (invariant)
            pl.BlockSpec((1, 2 * A), lambda i: (0, 0)),       # bias   (invariant)
        ],
        out_specs=(
            pl.BlockSpec((TB, 1), lambda i: (i, 0)),
            pl.BlockSpec((TB, 2 * A), lambda i: (i, 0)),
        ),
        compiler_params=pltpu.CompilerParams(
            dimension_semantics=("parallel",),
            # TB=8192: x 8 MiB + asp 8 MiB + prob 8 MiB (lane-padded) double-
            # buffered ~= 24 MiB -> fits the 32 MiB scoped limit everywhere.
            vmem_limit_bytes=32 * 1024 * 1024,
            # Let XLA fuse the gather/concat producer into the packed-x input
            # instead of materializing it in HBM.  Weight/bias stay as-is.
            allow_input_fusion=[True, False, False],
        ),
        cost_estimate=pl.CostEstimate(
            flops=flops, transcendentals=B_pad, bytes_accessed=bytes_accessed),
    )(x, w2, b2)

    return prob[:B, 0], asp[:B, :A], asp[:B, A:]


def init_params(key, user_num, item_num, aspect_num, embed_size1, embed_size2):
    k = jax.random.split(key, 6)
    bound = 1.0 / jnp.sqrt(embed_size1)
    # nn.Embedding default init: N(0, 1)
    embed_u1 = jax.random.normal(k[0], (user_num, embed_size1), jnp.float32)
    embed_u2 = jax.random.normal(k[1], (user_num, embed_size2), jnp.float32)
    return {
        # User tables stored pre-concatenated -> one gather per id at runtime.
        "embed_u": jnp.concatenate([embed_u1, embed_u2], axis=1),
        # Kept only for parameter parity with the PyTorch module (unused in
        # forward, exactly as in the original module).
        "embed_i1": jax.random.normal(k[2], (item_num, embed_size1), jnp.float32),
        "embed_i2": jax.random.normal(k[3], (item_num, embed_size2), jnp.float32),
        # nn.Linear default init: U(-1/sqrt(fan_in), 1/sqrt(fan_in)).
        # Stored pre-transposed as [E1, A] (torch keeps (A, E1)).
        "lin_w_t": jax.random.uniform(k[4], (embed_size1, aspect_num), jnp.float32,
                                      -bound, bound),
        "lin_b": jax.random.uniform(k[5], (aspect_num,), jnp.float32,
                                    -bound, bound),
    }


if __name__ == "__main__":
    user_num, item_num = 16, 24
    aspect_num, embed_size1, embed_size2 = 8, 32, 32
    B = 8

    key = jax.random.PRNGKey(0)
    pkey, ukey, ikey = jax.random.split(key, 3)
    params = init_params(pkey, user_num, item_num, aspect_num,
                         embed_size1, embed_size2)

    user_id = jax.random.randint(ukey, (B,), 0, user_num, dtype=jnp.int32)
    item_id = jax.random.randint(ikey, (B,), 0, item_num, dtype=jnp.int32)

    prob, pred_asp_u, pred_asp_i = jax.jit(zhang_forward)(params, user_id, item_id)
    jax.block_until_ready((prob, pred_asp_u, pred_asp_i))

    # cross-check against a pure-JAX reference (same clamped-gather semantics)
    uv = params["embed_u"][user_id]
    iv = params["embed_u"][item_id]
    u1 = uv[:, :embed_size1]
    i1 = iv[:, :embed_size1]
    ref_prob = jax.nn.sigmoid(jnp.sum(uv * iv, axis=1))
    ref_pau = u1 @ params["lin_w_t"] + params["lin_b"]
    ref_pai = i1 @ params["lin_w_t"] + params["lin_b"]
    assert prob.shape == (B,)
    assert pred_asp_u.shape == (B, aspect_num)
    assert pred_asp_i.shape == (B, aspect_num)
    assert jnp.allclose(prob, ref_prob, atol=1e-5)
    assert jnp.allclose(pred_asp_u, ref_pau, atol=1e-5)
    assert jnp.allclose(pred_asp_i, ref_pai, atol=1e-5)

    print("KERNEL_OK")
</pallas_src>

<mosaic_0001>
module attributes {stable_mosaic.version = 11 : i64} {
  func.func @zhang_kernel(%arg0: i32, %arg1: memref<8x128xf32, #tpu.memory_space<vmem>>, %arg2: memref<128x16xf32, #tpu.memory_space<vmem>>, %arg3: memref<1x16xf32, #tpu.memory_space<vmem>>, %arg4: memref<8x1xf32, #tpu.memory_space<vmem>>, %arg5: memref<8x16xf32, #tpu.memory_space<vmem>>) attributes {dimension_semantics = [#tpu.dimension_semantics<parallel>], iteration_bounds = array<i64: 1>, scalar_prefetch = 0 : i64, scratch_operands = 0 : i64, tpu.core_type = #tpu.core_type<tc>, window_params = [{transform_indices = @transform_0, window_bounds = array<i64: 8, 128>}, {pipeline_mode = #tpu.pipeline_mode<synchronous>, transform_indices = @transform_1, window_bounds = array<i64: 128, 16>}, {pipeline_mode = #tpu.pipeline_mode<synchronous>, transform_indices = @transform_2, window_bounds = array<i64: 1, 16>}, {transform_indices = @transform_3, window_bounds = array<i64: 8, 1>}, {transform_indices = @transform_4, window_bounds = array<i64: 8, 16>}]} {
    %c0 = arith.constant 0 : index
    %c0_0 = arith.constant 0 : index
    %0 = vector.load %arg1[%c0, %c0_0] : memref<8x128xf32, #tpu.memory_space<vmem>>, vector<8x128xf32>
    %c64_i32 = arith.constant 64 : i32
    %1 = tpu.dynamic_rotate %0 by %c64_i32 dim 1 : vector<8x128xf32>, i32 -> vector<8x128xf32>
    %2 = arith.mulf %0, %1 : vector<8x128xf32>
    %cst = arith.constant dense<0.000000e+00> : vector<8xf32>
    %3 = vector.multi_reduction <add>, %2, %cst [1] : vector<8x128xf32> to vector<8xf32>
    %4 = vector.shape_cast %3 : vector<8xf32> to vector<8x1xf32>
    %cst_1 = arith.constant 5.000000e-01 : f32
    %5 = vector.broadcast %cst_1 : f32 to vector<8x1xf32>
    %6 = arith.mulf %5, %4 : vector<8x1xf32>
    %7 = arith.negf %6 : vector<8x1xf32>
    %8 = math.exp %7 : vector<8x1xf32>
    %cst_2 = arith.constant 1.000000e+00 : f32
    %9 = vector.broadcast %cst_2 : f32 to vector<8x1xf32>
    %10 = arith.addf %9, %8 : vector<8x1xf32>
    %11 = arith.divf %9, %10 : vector<8x1xf32>
    %c0_3 = arith.constant 0 : index
    %c0_4 = arith.constant 0 : index
    %12 = vector.load %arg4[%c0_3, %c0_4] : memref<8x1xf32, #tpu.memory_space<vmem>>, vector<8x1xf32>
    tpu.vector_store %arg4[%c0_3, %c0_4], %11 {strides = array<i32>} : memref<8x1xf32, #tpu.memory_space<vmem>>, vector<8x1xf32>,
    %c0_5 = arith.constant 0 : index
    %c0_6 = arith.constant 0 : index
    %13 = vector.load %arg2[%c0_5, %c0_6] : memref<128x16xf32, #tpu.memory_space<vmem>>, vector<128x16xf32>
    %cst_7 = arith.constant dense<0.000000e+00> : vector<8x16xf32>
    %14 = tpu.matmul %0, %13, %cst_7 {dimension_numbers = #tpu.dot_dimension_numbers<[1], [0], [0], [1], [0, 0, 1, 1], [], []>} : vector<8x128xf32>, vector<128x16xf32>, vector<8x16xf32> -> vector<8x16xf32>
    %c0_8 = arith.constant 0 : index
    %c0_9 = arith.constant 0 : index
    %15 = vector.load %arg3[%c0_8, %c0_9] : memref<1x16xf32, #tpu.memory_space<vmem>>, vector<1x16xf32>
    %16 = vector.broadcast %15 : vector<1x16xf32> to vector<8x16xf32>
    %17 = arith.addf %14, %16 : vector<8x16xf32>
    %c0_10 = arith.constant 0 : index
    %c0_11 = arith.constant 0 : index
    %18 = vector.load %arg5[%c0_10, %c0_11] : memref<8x16xf32, #tpu.memory_space<vmem>>, vector<8x16xf32>
    tpu.vector_store %arg5[%c0_10, %c0_11], %17 {strides = array<i32>} : memref<8x16xf32, #tpu.memory_space<vmem>>, vector<8x16xf32>,
    return
  }
  func.func @transform_0(%arg0: i32) -> (i32, i32) {
    %c0_i32 = arith.constant 0 : i32
    %c0_i32_0 = arith.constant 0 : i32
    return %arg0, %c0_i32 : i32, i32
  }
  func.func @transform_1(%arg0: i32) -> (i32, i32) {
    %c0_i32 = arith.constant 0 : i32
    %c0_i32_0 = arith.constant 0 : i32
    %c0_i32_1 = arith.constant 0 : i32
    return %c0_i32, %c0_i32_0 : i32, i32
  }
  func.func @transform_2(%arg0: i32) -> (i32, i32) {
    %c0_i32 = arith.constant 0 : i32
    %c0_i32_0 = arith.constant 0 : i32
    %c0_i32_1 = arith.constant 0 : i32
    return %c0_i32, %c0_i32_0 : i32, i32
  }
  func.func @transform_3(%arg0: i32) -> (i32, i32) {
    %c0_i32 = arith.constant 0 : i32
    %c0_i32_0 = arith.constant 0 : i32
    return %arg0, %c0_i32 : i32, i32
  }
  func.func @transform_4(%arg0: i32) -> (i32, i32) {
    %c0_i32 = arith.constant 0 : i32
    %c0_i32_0 = arith.constant 0 : i32
    return %arg0, %c0_i32 : i32, i32
  }
}

</mosaic_0001>

<bundles_post_ra>
// kernel: zhang_forward.2
= control target key start
LH: loop header
LB: loop body
LE: loop exit
PB: predicated region body
PF: predicated region fallthrough
CT: control target
= control target key end

     0   :  { %v53_v1 = vlaneseq  ;;  %v286_v4 = vmov 0.0|0.0   ;;  %vm287_vm0 = vmmov 0   ;;  %v288_v9 = vmov 0.0   ;;  %s289_s15 = smov 64   ;;  %s393_s0 = inlined_call_operand.vmem [shape: f32[128,16], index: 0, kind: input, shape index: {}]   ;;  %s394_s1 = inlined_call_operand.vmem [shape: f32[1,16], index: 1, kind: input, shape index: {}]   ;;  %s395_s2 = inlined_call_operand.vmem [shape: f32[8,64], index: 2, kind: input, shape index: {}]   ;;  %s396_s3 = inlined_call_operand.<no memory space> [shape: f32[], index: 3, kind: input, shape index: {}]   ;;  %s397_s4 = inlined_call_operand.vmem [shape: f32[8,64], index: 4, kind: input, shape index: {}]   ;;  %s398_s5 = inlined_call_operand.vmem [shape: f32[8,1], index: 5, kind: output, shape index: {0}]   ;;  %s399_s6 = inlined_call_operand.vmem [shape: f32[8,16], index: 6, kind: output, shape index: {1}]  }
   0x1   :  { %v12_v0 = vstv %s396_s3  ;;  %v91_v2 = vld [vmem:[%s393_s0] sm:$0xff]  ;;  %v92_v3 = vld [vmem:[%s393_s0 + $0x8] sm:$0xff]  ;;  %254 = vmatprep.subr.bf16.mxu0 %v286_v4  ;;  %v93_v6 = vld [vmem:[%s393_s0 + $0x10] sm:$0xff]  ;;  %251 = vmatprep.mubr.msk.f32.mxu0 %vm287_vm0, %v288_v9  ;;  %vm184_vm3 = vcmask 130048   ;;  %vm89_vm4 = vcmask 7168  }
   0x2   :  { %v255_v5 = vpack.c.bf16 %v92_v3, %v91_v2  ;;  %v94_v7 = vld [vmem:[%s393_s0 + $0x18] sm:$0xff]  ;;  %v54_v8 = vand.u32 127, %v53_v1  ;;  %v52_v11 = vld [vmem:[%s395_s2] sm:$0xff]  ;;  %v96_v14 = vld [vmem:[%s393_s0 + $0x28] sm:$0xff] }
   0x3   :  { %v258_v10 = vpack.c.bf16 %v94_v7, %v93_v6  ;;  %v95_v13 = vld [vmem:[%s393_s0 + $0x20] sm:$0xff]  ;;  %v97_v18 = vld [vmem:[%s393_s0 + $0x30] sm:$0xff]  ;;  %v98_v19 = vld [vmem:[%s393_s0 + $0x38] sm:$0xff] }
   0x4   :  { %256 = vmatpush3.bf16.msra.mxu0 %v255_v5  ;;  %v55_v12 = vadd.s32 128, %v54_v8  ;;  %vm60_vm1 = vcmp.lt.s32.totalorder %v54_v8, 64  ;;  %v261_v16 = vpack.c.bf16 %v96_v14, %v95_v13  ;;  %v264_v20 = vpack.c.bf16 %v98_v19, %v97_v18  ;;  %v99_v21 = vld [vmem:[%s393_s0 + $0x40] sm:$0xff]  ;;  %v100_v22 = vld [vmem:[%s393_s0 + $0x48] sm:$0xff]  ;;  %v101_v24 = vld [vmem:[%s393_s0 + $0x50] sm:$0xff] }
   0x5   :  { %257 = vmatprep.subr.bf16.mxu0 %v286_v4  ;;  %v267_v23 = vpack.c.bf16 %v100_v22, %v99_v21  ;;  %v102_v25 = vld [vmem:[%s393_s0 + $0x58] sm:$0xff]  ;;  %v103_v27 = vld [vmem:[%s393_s0 + $0x60] sm:$0xff]  ;;  %v104_v28 = vld [vmem:[%s393_s0 + $0x68] sm:$0xff] }
   0x6   :  { %vm56_vm2 = vcmp.lt.s32.totalorder %v55_v12, 192  ;;  %v270_v26 = vpack.c.bf16 %v102_v25, %v101_v24  ;;  %v273_v29 = vpack.c.bf16 %v104_v28, %v103_v27  ;;  %v105_v30 = vld [vmem:[%s393_s0 + $0x70] sm:$0xff]  ;;  %v106_v31 = vld [vmem:[%s393_s0 + $0x78] sm:$0xff]  ;;  %v64_v33 = vld [vmem:[%s397_s4] sm:$0xff] }
   0x7   :  { %v57_v15 = vsel %vm56_vm2, %v52_v11, %v12_v0  ;;  %v276_v32 = vpack.c.bf16 %v106_v31, %v105_v30  ;;  %v69_v34 = vsel %vm60_vm1, %v64_v33, %v12_v0  ;;  %v201_v39 = vld [vmem:[%s394_s1] ss:$0 sm:$0xff] }
   0x8   :  { %259 = vmatpush3.bf16.msra.mxu0 %v258_v10  ;;  %v61_v17 = vsel %vm60_vm1, %v57_v15, %v12_v0 }
   0x9   :  { %260 = vmatprep.subr.bf16.mxu0 %v286_v4  ;;  %62 = vrot.lane.b32.xlu0 %v61_v17, %s289_s15 }
   0xc   :  { %262 = vmatpush3.bf16.msra.mxu0 %v261_v16 }
   0xd   :  { %263 = vmatprep.subr.bf16.mxu0 %v286_v4 }
  0x10   :  { %265 = vmatpush3.bf16.msra.mxu0 %v264_v20 }
  0x11   :  { %266 = vmatprep.subr.bf16.mxu0 %v286_v4 }
  0x14   :  { %268 = vmatpush3.bf16.msra.mxu0 %v267_v23 }
  0x15   :  { %269 = vmatprep.subr.bf16.mxu0 %v286_v4 }
  0x18   :  { %271 = vmatpush3.bf16.msra.mxu0 %v270_v26 }
  0x19   :  { %272 = vmatprep.subr.bf16.mxu0 %v286_v4 }
  0x1c   :  { %274 = vmatpush3.bf16.msra.mxu0 %v273_v29 }
  0x1d   :  { %275 = vmatprep.subr.bf16.mxu0 %v286_v4 }
  0x20   :  { %277 = vmatpush3.bf16.msra.mxu0 %v276_v32 }
  0x7b   :  { %v63_v35 = vpop.permute.xlu0 %62 }
  0x7c   :  { %v72_v36 = vmax.f32 %v69_v34, %v63_v35 }
  0x7e   :  { %77 = vrot.lane.b32.xlu0 %v72_v36, %s289_s15  ;;  %252 = vmatmul.mubr.f32.vlgmr.msra.gmra.mrb[0].mxu0 %v72_v36 }
  0xf0   :  { %v78_v37 = vpop.permute.xlu0 %77 }
  0xf1   :  { %v79_v38 = vmul.f32 %v78_v37, %v72_v36 }
  0xf3   :  { %80 = vadd.xlane.f32.xlu1 %v79_v38 }
 0x151   :  { %v180_v40 = vpop.f32.mrb[0].mxu0 }
 0x152   :  { %v181_v41 = vadd.f32 %v201_v39, %v180_v40  ;;  %v253_v42 = vpop.f32.mrb[1].mxu0 }
 0x154   :  { %185 = vst.msk [vmem:[%s399_s6] sm:$0xff] %vm184_vm3, %v181_v41 }
 0x180   :  { %v81_v43 = vpop.xlane.xlu1 %80 }
 0x181   :  { %v200_v44 = vmul.f32 -0.5, %v81_v43 }
 0x183   :  { %v84_v45 = vmul.f32 1.442695, %v200_v44 }
 0x185   :  { %282 = vpow2.f32 %v84_v45 }
 0x18f   :  { %v283_v46 = vpop.eup %282 }
 0x190   :  { %v86_v47 = vadd.f32 1.0, %v283_v46 }
 0x192   :  { %284 = vrcp.f32 %v86_v47 }
 0x19c   :  { %v285_v48 = vpop.eup %284 }
 0x19d   :  { %90 = vst.msk [vmem:[%s398_s5] sm:$0xff] %vm89_vm4, %v285_v48 }

</bundles_post_ra>
